<compile_context>
chip_gen: v7x
topology: tpu7x:2x2x1
jax: 0.10.0
libtpu: 0.0.40
codegen_flags: <defaults>
</compile_context>

<pallas_src>
import functools
import math

import numpy as np
import jax
import jax.numpy as jnp
from jax import lax
from jax.experimental import pallas as pl
from jax.experimental.pallas import tpu as pltpu

# Version-tolerant compiler-params lookup (CompilerParams on current jax,
# TPUCompilerParams on some older releases).
_CompilerParams = getattr(pltpu, "CompilerParams", None)
if _CompilerParams is None:  # pragma: no cover
    _CompilerParams = getattr(pltpu, "TPUCompilerParams")


def _round_up(x, m):
    return ((x + m - 1) // m) * m


def _pick_tile(hw_pad, cap):
    """Largest multiple of 128 that divides hw_pad and is <= cap (exact tiles only)."""
    m = hw_pad // 128
    for d in range(max(1, min(cap // 128, m)), 0, -1):
        if m % d == 0:
            return d * 128
    return 128


# --------------------------------------------------------------------------
# Kernel 1: attention-adjusted norm_sem + codebook decomposition
#           (tiled over tokens, online softmax, finalize on last step).
# --------------------------------------------------------------------------
def _prep_kernel(x_ref, sem_ref, qk_ref, wv_ref, bv_ref, emb_ref,
                 norm_sem_ref, norm_sem_t_ref, sim_es_t_ref,
                 e_perp_ref, e_perp_t_ref, ep_sq_ref,
                 m_scr, l_scr, acc_scr, *, hw, tile, padded):
    bi = pl.program_id(0)
    j = pl.program_id(1)

    @pl.when((bi == 0) & (j == 0))
    def _init():
        m_scr[...] = jnp.full_like(m_scr, -jnp.inf)
        l_scr[...] = jnp.zeros_like(l_scr)
        acc_scr[...] = jnp.zeros_like(acc_scr)

    z_t = x_ref[0].astype(jnp.float32)        # (e_dim, tile) tokens on lanes (NCHW native)

    # scores = (1/sqrt(D)) * ((sem@wq.T + bq) @ wk) @ z ; qk is precomputed once
    # in the wrapper and bk (a per-row constant) cancels in the softmax.
    scores = jnp.dot(qk_ref[...], z_t, preferred_element_type=jnp.float32)    # (T, tile)
    if padded:   # mask zero-padded token columns (only the last j tile has any)
        col = lax.broadcasted_iota(jnp.int32, scores.shape, 1)
        scores = jnp.where(j * tile + col < hw, scores, jnp.float32(-jnp.inf))

    # online softmax over all N = b*h*w tokens; accumulate the context in
    # z-space (attn @ z) -- wv/bv are applied once in the finalize since the
    # attention rows sum to 1.
    m_prev = m_scr[...]
    m_new = jnp.maximum(m_prev, jnp.max(scores, axis=1, keepdims=True))       # (T, 1)
    alpha = jnp.exp(m_prev - m_new)
    p = jnp.exp(scores - m_new)                                               # (T, tile)
    l_scr[...] = alpha * l_scr[...] + jnp.sum(p, axis=1, keepdims=True)
    acc_scr[...] = alpha * acc_scr[...] + lax.dot_general(
        p, z_t, (((1,), (1,)), ((), ())), preferred_element_type=jnp.float32)  # (T, D)
    m_scr[...] = m_new

    @pl.when((bi == pl.num_programs(0) - 1) & (j == pl.num_programs(1) - 1))
    def _finalize():
        zbar = acc_scr[...] / l_scr[...]                                      # (T, D)
        context = lax.dot_general(zbar, wv_ref[...], (((1,), (1,)), ((), ())),
                                  preferred_element_type=jnp.float32) + bv_ref[...]
        sem_adj = sem_ref[...] + context
        nrm = jnp.sqrt(jnp.sum(sem_adj * sem_adj, axis=-1, keepdims=True))
        norm_sem = sem_adj / jnp.maximum(nrm, 1e-12)                          # F.normalize
        norm_sem_ref[...] = norm_sem
        norm_sem_t_ref[...] = norm_sem.T                                      # (D, T)

        emb = emb_ref[...]                                                    # (n_e, D)
        # sim_es^T = norm_sem @ e^T   (T, n_e) -- layout used by the quant kernel
        sim_es_t_ref[...] = lax.dot_general(
            norm_sem, emb, (((1,), (1,)), ((), ())),
            preferred_element_type=jnp.float32)
        # e_perp = e - (e @ norm_sem^T) @ norm_sem
        sim_es = lax.dot_general(emb, norm_sem, (((1,), (1,)), ((), ())),
                                 preferred_element_type=jnp.float32)          # (n_e, T)
        e_perp = emb - jnp.dot(sim_es, norm_sem,
                               preferred_element_type=jnp.float32)            # (n_e, D)
        e_perp_ref[...] = e_perp
        e_perp_t_ref[...] = e_perp.T                                          # (D, n_e)
        ep_sq_ref[...] = jnp.sum(e_perp * e_perp, axis=1, keepdims=True)      # (n_e, 1)


# --------------------------------------------------------------------------
# Kernel 2: per-token quantization (tiled over tokens, tokens on lanes).
# --------------------------------------------------------------------------
def _quantize_kernel(x_ref, ns_ref, ns_t_ref, sim_es_t_ref, e_perp_ref,
                     e_perp_t_ref, ep_sq_ref, zq_ref, idx_ref, *, n_e, T):
    z_t = x_ref[0].astype(jnp.float32)  # (D, tile)  tokens on lanes
    ns = ns_ref[...]                    # (T, D)
    ns_t = ns_t_ref[...]                # (D, T)
    sim_es_t = sim_es_t_ref[...]        # (T, n_e)
    e_perp = e_perp_ref[...]            # (n_e, D)
    e_perp_t = e_perp_t_ref[...]        # (D, n_e)
    ep_sq = ep_sq_ref[...]              # (n_e, 1)

    # sim_zs^T = norm_sem @ z^T ;  z_perp^T = z^T - norm_sem^T @ sim_zs^T
    sim_zs_t = jnp.dot(ns, z_t, preferred_element_type=jnp.float32)           # (T, tile)
    z_perp_t = z_t - jnp.dot(ns_t, sim_zs_t, preferred_element_type=jnp.float32)

    # ----- perpendicular code: argmin_j ||z_perp - e_perp_j||^2
    #       (the per-token |z_perp|^2 term is constant over j and dropped)
    cross_t = jnp.dot(e_perp, z_perp_t, preferred_element_type=jnp.float32)   # (n_e, tile)
    d_perp = ep_sq - 2.0 * cross_t                                            # (n_e, tile)
    min_q = jnp.min(d_perp, axis=0, keepdims=True)                            # (1, tile)
    iota_e = lax.broadcasted_iota(jnp.int32, d_perp.shape, 0)
    idx_perp = jnp.min(jnp.where(d_perp == min_q, iota_e, n_e),
                       axis=0, keepdims=True).astype(jnp.int32)               # (1, tile)
    onehot_q = (iota_e == idx_perp).astype(jnp.float32)                       # (n_e, tile)

    # ----- per-axis projection codes: argmin_j |sim_es[j,t] - sim_zs[t,tok]|
    #       (T, n_e, tile) layout: the token axis fills all 128 lanes.
    # TODO(synk): for n_e >= 256 swap this dense O(T*n_e*tile) VALU region for a
    # per-T sorted sim_es (from the prep finalize) + branchless binary search.
    d_proj = jnp.abs(sim_es_t[:, :, None] - sim_zs_t[:, None, :])             # (T, n_e, tile)
    min_p = jnp.min(d_proj, axis=1, keepdims=True)                            # (T, 1, tile)
    mask_p = d_proj == min_p
    idx_proj = jnp.min(
        jnp.where(mask_p, lax.broadcasted_iota(jnp.int32, d_proj.shape, 1), n_e),
        axis=1).astype(jnp.int32)                                             # (T, tile)
    # gather sim_es at the chosen code via a select-reduce (no one-hot matmul);
    # on exact float ties this may pick a different (equally minimal) code than
    # torch.argmin's first-index choice.
    sim_zqs = jnp.max(jnp.where(mask_p, sim_es_t[:, :, None], jnp.float32(-jnp.inf)),
                      axis=1)                                                 # (T, tile)

    # z_q^T = norm_sem^T @ sim_zqs^T + e_perp^T @ onehot^T  -> NCHW layout (D, tile)
    zq_t = (jnp.dot(ns_t, sim_zqs, preferred_element_type=jnp.float32)
            + jnp.dot(e_perp_t, onehot_q, preferred_element_type=jnp.float32))

    zq_ref[0] = zq_t.astype(zq_ref.dtype)
    idx_ref[0, :T, :] = idx_proj            # rows [0, T): projection codes
    idx_ref[0, T:, :] = idx_perp            # row  T:     perpendicular code


# --------------------------------------------------------------------------
# Wrapper.
# --------------------------------------------------------------------------
def sem_attn_vq_forward(x, params, *, prep_tile_cap=2048, quant_vmem_budget=24 << 20):
    """Eval-mode SemAttnVQ forward: returns (z_q [NCHW], indices (N, T+1), commit_loss)."""
    b, c, h, w = x.shape
    e_dim = c
    f32 = jnp.float32
    sem = params["sem"].astype(f32)
    emb = params["embedding"].astype(f32)
    wv = params["wv"].astype(f32)
    bv = params["bv"].astype(f32).reshape(1, -1)
    T = sem.shape[0]
    n_e = emb.shape[0]
    hw = h * w
    hw_pad = _round_up(hw, 128)
    padded = hw_pad != hw

    # Grid-invariant attention algebra hoisted out of the per-tile loop:
    # qk = (sem @ wq.T + bq) @ wk, folded with the 1/sqrt(e_dim) scale.
    # (bk adds a per-row constant to the scores and cancels in the softmax;
    #  wv/bv are applied once in the prep finalize.)
    q = sem @ params["wq"].astype(f32).T + params["bq"].astype(f32)
    qk = (q @ params["wk"].astype(f32)) * (1.0 / math.sqrt(e_dim))            # (T, D)

    # z stays in its NCHW-native (b, D, h*w) layout and original dtype: no wrapper
    # cast pass, and no pad pass unless h*w is not 128-aligned.
    x_r = x.reshape(b, c, hw)
    if padded:
        x_r = jnp.pad(x_r, ((0, 0), (0, 0), (0, hw_pad - hw)))

    # Decoupled tiles: prep is DMA-bound (per-tile VMEM only O((T+D)*tile)) ->
    # large tile; quant tile is sized by its (T, n_e, tile) f32 temporaries so it
    # also fits v7x's 64 MiB VMEM (v5e/v6e have 2x the headroom).
    prep_tile = _pick_tile(hw_pad, prep_tile_cap)
    quant_cap = max(128, (quant_vmem_budget // (6 * T * n_e * 4) // 128) * 128)
    quant_tile = _pick_tile(hw_pad, min(quant_cap, 1024))

    def full(shape):
        return pl.BlockSpec(shape, lambda bi, j: (0,) * len(shape))

    def cparams(sems, vmem_bytes):
        return _CompilerParams(dimension_semantics=sems, vmem_limit_bytes=vmem_bytes)

    x_spec_prep = pl.BlockSpec((1, e_dim, prep_tile), lambda bi, j: (bi, 0, j))
    # TODO(synk): on v5e, pipeline_mode=pl.Buffered(3) on x_spec_prep would hide the
    # exposed DMA latency of this now purely memory-bound loop.
    # TODO(synk): v7x could split this sequential softmax reduction across its two
    # TensorCores (per-core partial (m, l, acc) + merge epilogue); single-TC here.
    (norm_sem, norm_sem_t, sim_es_t, e_perp, e_perp_t, ep_sq) = pl.pallas_call(
        functools.partial(_prep_kernel, hw=hw, tile=prep_tile, padded=padded),
        out_shape=(jax.ShapeDtypeStruct((T, e_dim), f32),
                   jax.ShapeDtypeStruct((e_dim, T), f32),
                   jax.ShapeDtypeStruct((T, n_e), f32),
                   jax.ShapeDtypeStruct((n_e, e_dim), f32),
                   jax.ShapeDtypeStruct((e_dim, n_e), f32),
                   jax.ShapeDtypeStruct((n_e, 1), f32)),
        grid=(b, hw_pad // prep_tile),
        in_specs=[x_spec_prep,
                  full((T, e_dim)),          # sem
                  full((T, e_dim)),          # qk (pre-scaled)
                  full((e_dim, e_dim)),      # wv
                  full((1, e_dim)),          # bv
                  full((n_e, e_dim))],       # embedding
        out_specs=(full((T, e_dim)), full((e_dim, T)), full((T, n_e)),
                   full((n_e, e_dim)), full((e_dim, n_e)), full((n_e, 1))),
        scratch_shapes=[pltpu.VMEM((T, 1), f32),
                        pltpu.VMEM((T, 1), f32),
                        pltpu.VMEM((T, e_dim), f32)],
        compiler_params=cparams(("arbitrary", "arbitrary"), 32 * 1024 * 1024),
    )(x_r, sem, qk, wv, bv, emb)

    z_q_pad, idx_pad = pl.pallas_call(
        functools.partial(_quantize_kernel, n_e=n_e, T=T),
        out_shape=(jax.ShapeDtypeStruct((b, e_dim, hw_pad), x.dtype),
                   jax.ShapeDtypeStruct((b, T + 1, hw_pad), jnp.int32)),
        grid=(b, hw_pad // quant_tile),
        in_specs=[pl.BlockSpec((1, e_dim, quant_tile), lambda bi, j: (bi, 0, j)),
                  full((T, e_dim)), full((e_dim, T)),
                  full((T, n_e)),
                  full((n_e, e_dim)), full((e_dim, n_e)),
                  full((n_e, 1))],
        out_specs=(pl.BlockSpec((1, e_dim, quant_tile), lambda bi, j: (bi, 0, j)),
                   pl.BlockSpec((1, T + 1, quant_tile), lambda bi, j: (bi, 0, j))),
        compiler_params=cparams(("parallel", "parallel"), 48 * 1024 * 1024),
    )(x_r, norm_sem, norm_sem_t, sim_es_t, e_perp, e_perp_t, ep_sq)

    if padded:
        z_q_pad = z_q_pad[:, :, :hw]
        idx_pad = idx_pad[:, :, :hw]

    # z_q is already NCHW and x.dtype; straight-through z + (z_q - z).detach()
    # equals z_q numerically in eval.
    z_q = z_q_pad.reshape(b, c, h, w)
    min_encoding_indices = jnp.swapaxes(idx_pad, 1, 2).reshape(b * hw, T + 1)  # (N, T+1)
    commit_loss = jnp.float32(0.0)                                             # eval mode
    return z_q, min_encoding_indices, commit_loss


# --------------------------------------------------------------------------
# Deterministic parameter construction (shapes from SemAttnVQ.__init__).
# --------------------------------------------------------------------------
def make_params(key, n_e, e_dim, e_type_num):
    ks = jax.random.split(key, 8)
    lin_bound = 1.0 / math.sqrt(e_dim)
    kaiming_bound = math.sqrt(6.0 / e_dim)
    return {
        "sem": jax.random.normal(ks[0], (e_type_num, e_dim), jnp.float32),
        "wq": jax.random.uniform(ks[1], (e_dim, e_dim), jnp.float32, -lin_bound, lin_bound),
        "bq": jax.random.uniform(ks[2], (e_dim,), jnp.float32, -lin_bound, lin_bound),
        "wk": jax.random.uniform(ks[3], (e_dim, e_dim), jnp.float32, -lin_bound, lin_bound),
        "bk": jax.random.uniform(ks[4], (e_dim,), jnp.float32, -lin_bound, lin_bound),
        "wv": jax.random.uniform(ks[5], (e_dim, e_dim), jnp.float32, -lin_bound, lin_bound),
        "bv": jax.random.uniform(ks[6], (e_dim,), jnp.float32, -lin_bound, lin_bound),
        "embedding": jax.random.uniform(ks[7], (n_e, e_dim), jnp.float32,
                                        -kaiming_bound, kaiming_bound),
    }


# --------------------------------------------------------------------------
# Pure-JAX reference (mirrors the PyTorch eval forward).
# --------------------------------------------------------------------------
def reference_forward(x, params):
    b, c, h, w = x.shape
    e_dim = c
    sem = params["sem"]
    T = sem.shape[0]
    z = jnp.transpose(x, (0, 2, 3, 1)).reshape(-1, e_dim).astype(jnp.float32)
    q = sem @ params["wq"].T + params["bq"]
    k = z @ params["wk"].T + params["bk"]
    v = z @ params["wv"].T + params["bv"]
    attn = jax.nn.softmax((q @ k.T) / jnp.sqrt(jnp.float32(e_dim)), axis=1)
    sem_adj = sem + attn @ v
    norm_sem = sem_adj / jnp.maximum(
        jnp.linalg.norm(sem_adj, axis=-1, keepdims=True), 1e-12)
    sim_zs = z @ norm_sem.T
    z_perp = z - sim_zs @ norm_sem
    e = params["embedding"]
    sim_es = e @ norm_sem.T
    e_perp = e - sim_es @ norm_sem
    d_proj = jnp.abs(sim_es[None, :, :] - sim_zs[:, None, :])     # (N, n_e, T)
    idx_proj = jnp.argmin(d_proj, axis=1)
    d_perp = (jnp.sum(z_perp ** 2, -1, keepdims=True)
              + jnp.sum(e_perp ** 2, -1)[None, :] - 2.0 * z_perp @ e_perp.T)
    idx_perp = jnp.argmin(d_perp, axis=1)
    sim_zqs = sim_es[idx_proj, jnp.arange(T)[None, :]]
    z_q = sim_zqs @ norm_sem + e_perp[idx_perp]
    idx = jnp.concatenate([idx_proj, idx_perp[:, None]], axis=1)
    z_q = jnp.transpose(z_q.reshape(b, h, w, e_dim), (0, 3, 1, 2))
    return z_q, idx


if __name__ == "__main__":
    n_e, e_dim, e_type_num = 64, 32, 16
    key = jax.random.PRNGKey(0)
    kx, kp = jax.random.split(key)
    x = jax.random.normal(kx, (2, e_dim, 16, 16), jnp.float32)    # NCHW, N = 2*16*16 = 512
    params = make_params(kp, n_e, e_dim, e_type_num)

    z_q, min_idx, commit_loss = sem_attn_vq_forward(x, params)
    jax.block_until_ready((z_q, min_idx, commit_loss))

    z_q_ref, idx_ref = reference_forward(x, params)

    idx_match = np.asarray(min_idx) == np.asarray(idx_ref)
    assert idx_match.mean() > 0.999, f"index match rate {idx_match.mean()}"
    # compare z_q only on tokens whose codes agree exactly (guards against benign
    # argmin flips on float near-ties changing the reconstruction discontinuously)
    tok_ok = idx_match.all(axis=1)
    assert tok_ok.mean() > 0.99, f"token-level index match rate {tok_ok.mean()}"
    zq_np = np.asarray(z_q).transpose(0, 2, 3, 1).reshape(-1, e_dim)
    zq_ref_np = np.asarray(z_q_ref).transpose(0, 2, 3, 1).reshape(-1, e_dim)
    np.testing.assert_allclose(zq_np[tok_ok], zq_ref_np[tok_ok], rtol=2e-4, atol=2e-4)
    assert min_idx.shape == (2 * 16 * 16, e_type_num + 1)
    assert float(commit_loss) == 0.0
    print("KERNEL_OK")
</pallas_src>

<mosaic_0001>
module attributes {stable_mosaic.version = 11 : i64} {
  func.func @_prep_kernel(%arg0: i32, %arg1: i32, %arg2: memref<1x32x256xf32, #tpu.memory_space<vmem>>, %arg3: memref<16x32xf32, #tpu.memory_space<vmem>>, %arg4: memref<16x32xf32, #tpu.memory_space<vmem>>, %arg5: memref<32x32xf32, #tpu.memory_space<vmem>>, %arg6: memref<1x32xf32, #tpu.memory_space<vmem>>, %arg7: memref<64x32xf32, #tpu.memory_space<vmem>>, %arg8: memref<16x32xf32, #tpu.memory_space<vmem>>, %arg9: memref<32x16xf32, #tpu.memory_space<vmem>>, %arg10: memref<16x64xf32, #tpu.memory_space<vmem>>, %arg11: memref<64x32xf32, #tpu.memory_space<vmem>>, %arg12: memref<32x64xf32, #tpu.memory_space<vmem>>, %arg13: memref<64x1xf32, #tpu.memory_space<vmem>>, %arg14: memref<16x1xf32, #tpu.memory_space<vmem>>, %arg15: memref<16x1xf32, #tpu.memory_space<vmem>>, %arg16: memref<16x32xf32, #tpu.memory_space<vmem>>) attributes {dimension_semantics = [#tpu.dimension_semantics<arbitrary>, #tpu.dimension_semantics<arbitrary>], iteration_bounds = array<i64: 2, 1>, scalar_prefetch = 0 : i64, scratch_operands = 3 : i64, tpu.core_type = #tpu.core_type<tc>, window_params = [{transform_indices = @transform_0, window_bounds = array<i64: 1, 32, 256>}, {pipeline_mode = #tpu.pipeline_mode<synchronous>, transform_indices = @transform_1, window_bounds = array<i64: 16, 32>}, {pipeline_mode = #tpu.pipeline_mode<synchronous>, transform_indices = @transform_2, window_bounds = array<i64: 16, 32>}, {pipeline_mode = #tpu.pipeline_mode<synchronous>, transform_indices = @transform_3, window_bounds = array<i64: 32, 32>}, {pipeline_mode = #tpu.pipeline_mode<synchronous>, transform_indices = @transform_4, window_bounds = array<i64: 1, 32>}, {pipeline_mode = #tpu.pipeline_mode<synchronous>, transform_indices = @transform_5, window_bounds = array<i64: 64, 32>}, {pipeline_mode = #tpu.pipeline_mode<synchronous>, transform_indices = @transform_6, window_bounds = array<i64: 16, 32>}, {pipeline_mode = #tpu.pipeline_mode<synchronous>, transform_indices = @transform_7, window_bounds = array<i64: 32, 16>}, {pipeline_mode = #tpu.pipeline_mode<synchronous>, transform_indices = @transform_8, window_bounds = array<i64: 16, 64>}, {pipeline_mode = #tpu.pipeline_mode<synchronous>, transform_indices = @transform_9, window_bounds = array<i64: 64, 32>}, {pipeline_mode = #tpu.pipeline_mode<synchronous>, transform_indices = @transform_10, window_bounds = array<i64: 32, 64>}, {pipeline_mode = #tpu.pipeline_mode<synchronous>, transform_indices = @transform_11, window_bounds = array<i64: 64, 1>}]} {
    %c0_i32 = arith.constant 0 : i32
    %0 = arith.cmpi eq, %arg0, %c0_i32 : i32
    %c0_i32_0 = arith.constant 0 : i32
    %1 = arith.cmpi eq, %arg1, %c0_i32_0 : i32
    %2 = arith.andi %0, %1 : i1
    %3 = arith.extui %2 : i1 to i32
    %c0_i32_1 = arith.constant 0 : i32
    %4 = arith.cmpi ne, %3, %c0_i32_1 : i32
    scf.if %4 {
      %cst_23 = arith.constant 0xFF800000 : f32
      %36 = vector.broadcast %cst_23 : f32 to vector<16x1xf32>
      %c0_24 = arith.constant 0 : index
      %c0_25 = arith.constant 0 : index
      %37 = vector.load %arg14[%c0_24, %c0_25] : memref<16x1xf32, #tpu.memory_space<vmem>>, vector<16x1xf32>
      tpu.vector_store %arg14[%c0_24, %c0_25], %36 {strides = array<i32>} : memref<16x1xf32, #tpu.memory_space<vmem>>, vector<16x1xf32>,
      %cst_26 = arith.constant 0.000000e+00 : f32
      %38 = vector.broadcast %cst_26 : f32 to vector<16x1xf32>
      %c0_27 = arith.constant 0 : index
      %c0_28 = arith.constant 0 : index
      %39 = vector.load %arg15[%c0_27, %c0_28] : memref<16x1xf32, #tpu.memory_space<vmem>>, vector<16x1xf32>
      tpu.vector_store %arg15[%c0_27, %c0_28], %38 {strides = array<i32>} : memref<16x1xf32, #tpu.memory_space<vmem>>, vector<16x1xf32>,
      %cst_29 = arith.constant 0.000000e+00 : f32
      %40 = vector.broadcast %cst_29 : f32 to vector<16x32xf32>
      %c0_30 = arith.constant 0 : index
      %c0_31 = arith.constant 0 : index
      %41 = vector.load %arg16[%c0_30, %c0_31] : memref<16x32xf32, #tpu.memory_space<vmem>>, vector<16x32xf32>
      tpu.vector_store %arg16[%c0_30, %c0_31], %40 {strides = array<i32>} : memref<16x32xf32, #tpu.memory_space<vmem>>, vector<16x32xf32>,
    } else {
    }
    %c0 = arith.constant 0 : index
    %c0_2 = arith.constant 0 : index
    %c0_3 = arith.constant 0 : index
    %5 = vector.load %arg2[%c0, %c0_2, %c0_3] : memref<1x32x256xf32, #tpu.memory_space<vmem>>, vector<1x32x256xf32>
    %6 = vector.shape_cast %5 : vector<1x32x256xf32> to vector<32x256xf32>
    %c0_4 = arith.constant 0 : index
    %c0_5 = arith.constant 0 : index
    %7 = vector.load %arg4[%c0_4, %c0_5] : memref<16x32xf32, #tpu.memory_space<vmem>>, vector<16x32xf32>
    %cst = arith.constant dense<0.000000e+00> : vector<16x256xf32>
    %8 = tpu.matmul %7, %6, %cst {dimension_numbers = #tpu.dot_dimension_numbers<[1], [0], [0], [1], [0, 0, 1, 1], [], []>} : vector<16x32xf32>, vector<32x256xf32>, vector<16x256xf32> -> vector<16x256xf32>
    %c0_6 = arith.constant 0 : index
    %c0_7 = arith.constant 0 : index
    %9 = vector.load %arg14[%c0_6, %c0_7] : memref<16x1xf32, #tpu.memory_space<vmem>>, vector<16x1xf32>
    %cst_8 = arith.constant dense<0xFF800000> : vector<16xf32>
    %10 = vector.multi_reduction <maximumf>, %8, %cst_8 [1] : vector<16x256xf32> to vector<16xf32>
    %11 = vector.shape_cast %10 : vector<16xf32> to vector<16x1xf32>
    %12 = arith.maximumf %9, %11 : vector<16x1xf32>
    %13 = arith.subf %9, %12 : vector<16x1xf32>
    %14 = math.exp %13 : vector<16x1xf32>
    %15 = vector.broadcast %12 : vector<16x1xf32> to vector<16x256xf32>
    %16 = arith.subf %8, %15 : vector<16x256xf32>
    %17 = math.exp %16 : vector<16x256xf32>
    %c0_9 = arith.constant 0 : index
    %c0_10 = arith.constant 0 : index
    %18 = vector.load %arg15[%c0_9, %c0_10] : memref<16x1xf32, #tpu.memory_space<vmem>>, vector<16x1xf32>
    %19 = arith.mulf %14, %18 : vector<16x1xf32>
    %cst_11 = arith.constant dense<0.000000e+00> : vector<16xf32>
    %20 = vector.multi_reduction <add>, %17, %cst_11 [1] : vector<16x256xf32> to vector<16xf32>
    %21 = vector.shape_cast %20 : vector<16xf32> to vector<16x1xf32>
    %22 = arith.addf %19, %21 : vector<16x1xf32>
    %c0_12 = arith.constant 0 : index
    %c0_13 = arith.constant 0 : index
    %23 = vector.load %arg15[%c0_12, %c0_13] : memref<16x1xf32, #tpu.memory_space<vmem>>, vector<16x1xf32>
    tpu.vector_store %arg15[%c0_12, %c0_13], %22 {strides = array<i32>} : memref<16x1xf32, #tpu.memory_space<vmem>>, vector<16x1xf32>,
    %c0_14 = arith.constant 0 : index
    %c0_15 = arith.constant 0 : index
    %24 = vector.load %arg16[%c0_14, %c0_15] : memref<16x32xf32, #tpu.memory_space<vmem>>, vector<16x32xf32>
    %25 = vector.broadcast %14 : vector<16x1xf32> to vector<16x32xf32>
    %26 = arith.mulf %25, %24 : vector<16x32xf32>
    %cst_16 = arith.constant dense<0.000000e+00> : vector<16x32xf32>
    %27 = tpu.matmul %17, %6, %cst_16 {dimension_numbers = #tpu.dot_dimension_numbers<[1], [1], [0], [0], [0, 0, 1, 0], [], []>} : vector<16x256xf32>, vector<32x256xf32>, vector<16x32xf32> -> vector<16x32xf32>
    %28 = arith.addf %26, %27 : vector<16x32xf32>
    %c0_17 = arith.constant 0 : index
    %c0_18 = arith.constant 0 : index
    %29 = vector.load %arg16[%c0_17, %c0_18] : memref<16x32xf32, #tpu.memory_space<vmem>>, vector<16x32xf32>
    tpu.vector_store %arg16[%c0_17, %c0_18], %28 {strides = array<i32>} : memref<16x32xf32, #tpu.memory_space<vmem>>, vector<16x32xf32>,
    %c0_19 = arith.constant 0 : index
    %c0_20 = arith.constant 0 : index
    %30 = vector.load %arg14[%c0_19, %c0_20] : memref<16x1xf32, #tpu.memory_space<vmem>>, vector<16x1xf32>
    tpu.vector_store %arg14[%c0_19, %c0_20], %12 {strides = array<i32>} : memref<16x1xf32, #tpu.memory_space<vmem>>, vector<16x1xf32>,
    %c1_i32 = arith.constant 1 : i32
    %31 = arith.cmpi eq, %arg0, %c1_i32 : i32
    %c0_i32_21 = arith.constant 0 : i32
    %32 = arith.cmpi eq, %arg1, %c0_i32_21 : i32
    %33 = arith.andi %31, %32 : i1
    %34 = arith.extui %33 : i1 to i32
    %c0_i32_22 = arith.constant 0 : i32
    %35 = arith.cmpi ne, %34, %c0_i32_22 : i32
    scf.if %35 {
      %c0_23 = arith.constant 0 : index
      %c0_24 = arith.constant 0 : index
      %36 = vector.load %arg16[%c0_23, %c0_24] : memref<16x32xf32, #tpu.memory_space<vmem>>, vector<16x32xf32>
      %c0_25 = arith.constant 0 : index
      %c0_26 = arith.constant 0 : index
      %37 = vector.load %arg15[%c0_25, %c0_26] : memref<16x1xf32, #tpu.memory_space<vmem>>, vector<16x1xf32>
      %38 = vector.broadcast %37 : vector<16x1xf32> to vector<16x32xf32>
      %39 = arith.divf %36, %38 : vector<16x32xf32>
      %c0_27 = arith.constant 0 : index
      %c0_28 = arith.constant 0 : index
      %40 = vector.load %arg5[%c0_27, %c0_28] : memref<32x32xf32, #tpu.memory_space<vmem>>, vector<32x32xf32>
      %cst_29 = arith.constant dense<0.000000e+00> : vector<16x32xf32>
      %41 = tpu.matmul %39, %40, %cst_29 {dimension_numbers = #tpu.dot_dimension_numbers<[1], [1], [0], [0], [0, 0, 1, 0], [], []>} : vector<16x32xf32>, vector<32x32xf32>, vector<16x32xf32> -> vector<16x32xf32>
      %c0_30 = arith.constant 0 : index
      %c0_31 = arith.constant 0 : index
      %42 = vector.load %arg6[%c0_30, %c0_31] : memref<1x32xf32, #tpu.memory_space<vmem>>, vector<1x32xf32>
      %43 = vector.broadcast %42 : vector<1x32xf32> to vector<16x32xf32>
      %44 = arith.addf %41, %43 : vector<16x32xf32>
      %c0_32 = arith.constant 0 : index
      %c0_33 = arith.constant 0 : index
      %45 = vector.load %arg3[%c0_32, %c0_33] : memref<16x32xf32, #tpu.memory_space<vmem>>, vector<16x32xf32>
      %46 = arith.addf %45, %44 : vector<16x32xf32>
      %47 = arith.mulf %46, %46 : vector<16x32xf32>
      %cst_34 = arith.constant dense<0.000000e+00> : vector<16xf32>
      %48 = vector.multi_reduction <add>, %47, %cst_34 [1] : vector<16x32xf32> to vector<16xf32>
      %49 = vector.shape_cast %48 : vector<16xf32> to vector<16x1xf32>
      %50 = math.sqrt %49 : vector<16x1xf32>
      %cst_35 = arith.constant 9.99999996E-13 : f32
      %51 = vector.broadcast %cst_35 : f32 to vector<16x1xf32>
      %52 = arith.maximumf %50, %51 : vector<16x1xf32>
      %53 = vector.broadcast %52 : vector<16x1xf32> to vector<16x32xf32>
      %54 = arith.divf %46, %53 : vector<16x32xf32>
      %c0_36 = arith.constant 0 : index
      %c0_37 = arith.constant 0 : index
      %55 = vector.load %arg8[%c0_36, %c0_37] : memref<16x32xf32, #tpu.memory_space<vmem>>, vector<16x32xf32>
      tpu.vector_store %arg8[%c0_36, %c0_37], %54 {strides = array<i32>} : memref<16x32xf32, #tpu.memory_space<vmem>>, vector<16x32xf32>,
      %56 = tpu.transpose %54, [1, 0] : vector<16x32xf32> -> vector<32x16xf32>
      %c0_38 = arith.constant 0 : index
      %c0_39 = arith.constant 0 : index
      %57 = vector.load %arg9[%c0_38, %c0_39] : memref<32x16xf32, #tpu.memory_space<vmem>>, vector<32x16xf32>
      tpu.vector_store %arg9[%c0_38, %c0_39], %56 {strides = array<i32>} : memref<32x16xf32, #tpu.memory_space<vmem>>, vector<32x16xf32>,
      %c0_40 = arith.constant 0 : index
      %c0_41 = arith.constant 0 : index
      %58 = vector.load %arg7[%c0_40, %c0_41] : memref<64x32xf32, #tpu.memory_space<vmem>>, vector<64x32xf32>
      %cst_42 = arith.constant dense<0.000000e+00> : vector<16x64xf32>
      %59 = tpu.matmul %54, %58, %cst_42 {dimension_numbers = #tpu.dot_dimension_numbers<[1], [1], [0], [0], [0, 0, 1, 0], [], []>} : vector<16x32xf32>, vector<64x32xf32>, vector<16x64xf32> -> vector<16x64xf32>
      %c0_43 = arith.constant 0 : index
      %c0_44 = arith.constant 0 : index
      %60 = vector.load %arg10[%c0_43, %c0_44] : memref<16x64xf32, #tpu.memory_space<vmem>>, vector<16x64xf32>
      tpu.vector_store %arg10[%c0_43, %c0_44], %59 {strides = array<i32>} : memref<16x64xf32, #tpu.memory_space<vmem>>, vector<16x64xf32>,
      %cst_45 = arith.constant dense<0.000000e+00> : vector<64x16xf32>
      %61 = tpu.matmul %58, %54, %cst_45 {dimension_numbers = #tpu.dot_dimension_numbers<[1], [1], [0], [0], [0, 0, 1, 0], [], []>} : vector<64x32xf32>, vector<16x32xf32>, vector<64x16xf32> -> vector<64x16xf32>
      %cst_46 = arith.constant dense<0.000000e+00> : vector<64x32xf32>
      %62 = tpu.matmul %61, %54, %cst_46 {dimension_numbers = #tpu.dot_dimension_numbers<[1], [0], [0], [1], [0, 0, 1, 1], [], []>} : vector<64x16xf32>, vector<16x32xf32>, vector<64x32xf32> -> vector<64x32xf32>
      %63 = arith.subf %58, %62 : vector<64x32xf32>
      %c0_47 = arith.constant 0 : index
      %c0_48 = arith.constant 0 : index
      %64 = vector.load %arg11[%c0_47, %c0_48] : memref<64x32xf32, #tpu.memory_space<vmem>>, vector<64x32xf32>
      tpu.vector_store %arg11[%c0_47, %c0_48], %63 {strides = array<i32>} : memref<64x32xf32, #tpu.memory_space<vmem>>, vector<64x32xf32>,
      %65 = tpu.transpose %63, [1, 0] : vector<64x32xf32> -> vector<32x64xf32>
      %c0_49 = arith.constant 0 : index
      %c0_50 = arith.constant 0 : index
      %66 = vector.load %arg12[%c0_49, %c0_50] : memref<32x64xf32, #tpu.memory_space<vmem>>, vector<32x64xf32>
      tpu.vector_store %arg12[%c0_49, %c0_50], %65 {strides = array<i32>} : memref<32x64xf32, #tpu.memory_space<vmem>>, vector<32x64xf32>,
      %67 = arith.mulf %63, %63 : vector<64x32xf32>
      %cst_51 = arith.constant dense<0.000000e+00> : vector<64xf32>
      %68 = vector.multi_reduction <add>, %67, %cst_51 [1] : vector<64x32xf32> to vector<64xf32>
      %69 = vector.shape_cast %68 : vector<64xf32> to vector<64x1xf32>
      %c0_52 = arith.constant 0 : index
      %c0_53 = arith.constant 0 : index
      %70 = vector.load %arg13[%c0_52, %c0_53] : memref<64x1xf32, #tpu.memory_space<vmem>>, vector<64x1xf32>
      tpu.vector_store %arg13[%c0_52, %c0_53], %69 {strides = array<i32>} : memref<64x1xf32, #tpu.memory_space<vmem>>, vector<64x1xf32>,
    } else {
    }
    return
  }
  func.func @transform_0(%arg0: i32, %arg1: i32) -> (i32, i32, i32) {
    %c0_i32 = arith.constant 0 : i32
    %c0_i32_0 = arith.constant 0 : i32
    return %arg0, %c0_i32, %arg1 : i32, i32, i32
  }
  func.func @transform_1(%arg0: i32, %arg1: i32) -> (i32, i32) {
    %c0_i32 = arith.constant 0 : i32
    %c0_i32_0 = arith.constant 0 : i32
    %c0_i32_1 = arith.constant 0 : i32
    return %c0_i32, %c0_i32_0 : i32, i32
  }
  func.func @transform_2(%arg0: i32, %arg1: i32) -> (i32, i32) {
    %c0_i32 = arith.constant 0 : i32
    %c0_i32_0 = arith.constant 0 : i32
    %c0_i32_1 = arith.constant 0 : i32
    return %c0_i32, %c0_i32_0 : i32, i32
  }
  func.func @transform_3(%arg0: i32, %arg1: i32) -> (i32, i32) {
    %c0_i32 = arith.constant 0 : i32
    %c0_i32_0 = arith.constant 0 : i32
    %c0_i32_1 = arith.constant 0 : i32
    return %c0_i32, %c0_i32_0 : i32, i32
  }
  func.func @transform_4(%arg0: i32, %arg1: i32) -> (i32, i32) {
    %c0_i32 = arith.constant 0 : i32
    %c0_i32_0 = arith.constant 0 : i32
    %c0_i32_1 = arith.constant 0 : i32
    return %c0_i32, %c0_i32_0 : i32, i32
  }
  func.func @transform_5(%arg0: i32, %arg1: i32) -> (i32, i32) {
    %c0_i32 = arith.constant 0 : i32
    %c0_i32_0 = arith.constant 0 : i32
    %c0_i32_1 = arith.constant 0 : i32
    return %c0_i32, %c0_i32_0 : i32, i32
  }
  func.func @transform_6(%arg0: i32, %arg1: i32) -> (i32, i32) {
    %c0_i32 = arith.constant 0 : i32
    %c0_i32_0 = arith.constant 0 : i32
    %c0_i32_1 = arith.constant 0 : i32
    return %c0_i32, %c0_i32_0 : i32, i32
  }
  func.func @transform_7(%arg0: i32, %arg1: i32) -> (i32, i32) {
    %c0_i32 = arith.constant 0 : i32
    %c0_i32_0 = arith.constant 0 : i32
    %c0_i32_1 = arith.constant 0 : i32
    return %c0_i32, %c0_i32_0 : i32, i32
  }
  func.func @transform_8(%arg0: i32, %arg1: i32) -> (i32, i32) {
    %c0_i32 = arith.constant 0 : i32
    %c0_i32_0 = arith.constant 0 : i32
    %c0_i32_1 = arith.constant 0 : i32
    return %c0_i32, %c0_i32_0 : i32, i32
  }
  func.func @transform_9(%arg0: i32, %arg1: i32) -> (i32, i32) {
    %c0_i32 = arith.constant 0 : i32
    %c0_i32_0 = arith.constant 0 : i32
    %c0_i32_1 = arith.constant 0 : i32
    return %c0_i32, %c0_i32_0 : i32, i32
  }
  func.func @transform_10(%arg0: i32, %arg1: i32) -> (i32, i32) {
    %c0_i32 = arith.constant 0 : i32
    %c0_i32_0 = arith.constant 0 : i32
    %c0_i32_1 = arith.constant 0 : i32
    return %c0_i32, %c0_i32_0 : i32, i32
  }
  func.func @transform_11(%arg0: i32, %arg1: i32) -> (i32, i32) {
    %c0_i32 = arith.constant 0 : i32
    %c0_i32_0 = arith.constant 0 : i32
    %c0_i32_1 = arith.constant 0 : i32
    return %c0_i32, %c0_i32_0 : i32, i32
  }
}

</mosaic_0001>

<bundles_post_ra>
// kernel: tpu_custom_call.1
= control target key start
LH: loop header
LB: loop body
LE: loop exit
PB: predicated region body
PF: predicated region fallthrough
CT: control target
= control target key end

     0   :  { %17 = vsyncpa [#allocation6], 0  ;;  %s2456_s0 = inlined_call_operand.hbm [shape: f32[2,32,256], index: 0, kind: input, shape index: {}]   ;;  %s2457_s1 = inlined_call_operand.vmem [shape: f32[16,32], index: 1, kind: input, shape index: {}]   ;;  %s2458_s2 = inlined_call_operand.vmem [shape: f32[16,32], index: 2, kind: input, shape index: {}]   ;;  %s2459_s3 = inlined_call_operand.vmem [shape: f32[32,32], index: 3, kind: input, shape index: {}]   ;;  %s2460_s4 = inlined_call_operand.vmem [shape: f32[1,32], index: 4, kind: input, shape index: {}]   ;;  %s2461_s5 = inlined_call_operand.vmem [shape: f32[64,32], index: 5, kind: input, shape index: {}]   ;;  %s2462_s6 = inlined_call_operand.hbm [shape: f32[16,32], index: 6, kind: output, shape index: {0}]   ;;  %s2463_s7 = inlined_call_operand.vmem [shape: f32[32,16], index: 7, kind: output, shape index: {1}]   ;;  %s2464_s8 = inlined_call_operand.hbm [shape: f32[16,64], index: 8, kind: output, shape index: {2}]   ;;  %s2465_s9 = inlined_call_operand.vmem [shape: f32[64,32], index: 9, kind: output, shape index: {3}]   ;;  %s2466_s10 = inlined_call_operand.hbm [shape: f32[32,64], index: 10, kind: output, shape index: {4}]   ;;  %s2467_s11 = inlined_call_operand.vmem [shape: f32[64,1], index: 11, kind: output, shape index: {5}]  }
   0x1   :  { %19 = vsyncpa [#allocation6 + $0x1], 0 }
   0x2   :  { %20 = vsyncpa [#allocation7], 0 }
   0x3   :  { %21 = vsyncpa [#allocation10], 0  ;;  %s2003_s17 = smov 0   ;;  %s2005_s18 = smov 0  }
   0x4   :  { %s2007_s19 = smov 0   ;;  %s2009_s20 = smov 0  }
   0x5   :  { %s2011_s21 = smov 0   ;;  %s2013_s22 = smov 0  }
   0x6 LB: > { %s2468_s23 = sadd.s32 4294967295, %s1928_s22   ;;  %s39_s24 = sadd.s32 1, %s1924_s21  ;;  %s1928_s22 = sphi %s2013_s22, %s27_s22   ;;  %s1924_s21 = sphi %s2011_s21, %s2480_s21   ;;  %s1920_s20 = sphi %s2009_s20, %s2479_s20   ;;  %s1916_s19 = sphi %s2007_s19, %s2478_s19   ;;  %s1912_s18 = sphi %s2005_s18, %s2477_s18   ;;  %s1908_s17 = sphi %s2003_s17, %s2476_s17  }
   0x7   : > { %p41_p0 = scmp.ge.s32.totalorder %s39_s24, 2  ;;  %s48_s25 = sadd.s32 1, %s1916_s19 }
   0x8   : > { %p55_p1 = scmp.ne.s32.totalorder %s1916_s19, %s1912_s18  ;;  %p56_p2 = scmp.eq.s32.totalorder %s1928_s22, 0 }
   0x9   : > { %s2482_s24 = smov (%p41_p0, %s39_s24), 0  ;;  %p61_p4 = scmp.ne.s32.totalorder %s1912_s18, %s1908_s17 }
   0xa   : > { %p2039_p3 = por %p56_p2, %p55_p1  ;;  %s43_s27 = ssub.s32 %s1924_s21, %s2482_s24 }
   0xb   : > { %p62_p5 = scmp.eq.s32.totalorder %s2468_s23, 0  ;;  %p46_p6 = scmp.eq.s32.totalorder %s43_s27, 0 }
   0xc   : > { %p1667_p8 = scmp.lt.s32.totalorder %s1928_s22, 2  ;;  %s331_s30 = sand.u32 1, %s1916_s19  }
   0xd   : > { %p2048_p7 = por %p62_p5, %p61_p4  ;;  %s1484_s12 = sshll.u32 %s1924_s21, 10 }
   0xe   : > { %s2054_s29 = scalar_select %p46_p6, %s1916_s19, %s48_s25  }
   0xf   : > { %s1432_s13 = sshll.u32 %s331_s30, 6  ;;  %s2061_s16 = scalar_lea.hbm %s2456_s0, %s1484_s12 }
  0x10   : > { %s335_s17 = scalar_lea.vmem [#allocation5], %s1432_s13  ;;  %p2065_p9 = pnand %p1667_p8, %p2039_p3 }
  0x11   : > { %s344_s27 = sshll.u32 %s335_s17, 4  ;;  %s2071_s25 = scalar_lea.sflag [#allocation6], %s331_s30  ;;  %s2069_s27 = int_to_ptr.vmem [resolvable:$true] %s344_s27 }
  0x12   : > { %s1762_s14 = scalar_lea.hbm %s2061_s16, 1024  ;;  %p1764_p11 = pneg %p2065_p9 }
  0x13   : > { %p1763_p10 = scmp.ne.s32.totalorder %s2061_s16, %s1762_s14  ;;  %s1767_s13 = scalar_lea.hbm %s2456_s0, 2048 }
  0x14   : > { %p1768_p0 = scmp.lt.u32.totalorder %s2061_s16, %s2456_s0  ;;  %p1769_p1 = scmp.lt.u32.totalorder %s1767_s13, %s1762_s14 }
  0x15   : > { %p1765_p12 = pnand %p1764_p11, %p1763_p10  ;;  %p1771_p3 = scmp.lt.u32.totalorder %s1762_s14, %s2061_s16 }
  0x16   : > { %p1770_p2 = por %p1769_p1, %p1768_p0 }
  0x17   : > { %p1766_p13 = pneg %p1765_p12 }
  0x18   : > { %p1772_p4 = por %p1771_p3, %p1770_p2 }
  0x1a   : > { %p1773_p5 = pnand %p1772_p4, %p1766_p13 }
  0x1c   : > { %1776 = shalt.err (!%p1773_p5)
}
  0x1d   : > { %s1777_s30 = scalar_lea.vmem %s2069_s27, 1024  ;;  %s1930_s12 = smov [#allocation5]  }
  0x1e   : > { %p1778_p6 = scmp.ne.s32.totalorder %s2069_s27, %s1777_s30  ;;  %s1782_s26 = sshll.u32 %s1930_s12, 4  ;;  %s1783_s26 = int_to_ptr.vmem [resolvable:$false] %s1782_s26 }
  0x1f   : > { %s1784_s15 = scalar_lea.vmem %s1783_s26, 2048  ;;  %p1785_p12 = scmp.lt.s32.totalorder %s2069_s27, %s1783_s26 }
  0x20   : > { %p1780_p8 = pnand %p1778_p6, %p1764_p11  ;;  %p1786_p0 = scmp.lt.s32.totalorder %s1784_s15, %s1777_s30 }
  0x22   : > { %p1781_p10 = pneg %p1780_p8  ;;  %p1787_p1 = por %p1786_p0, %p1785_p12 }
  0x24   : > { %p1788_p2 = pnand %p1787_p1, %p1781_p10 }
  0x26   : > { %1791 = shalt.err (!%p1788_p2)
}
  0x27   : > { %s1931_s14 = smov 256   ;;  %s1932_s13 = smov 16  }
  0x28   : > { %1666 = dma.hbm_to_vmem [thread:$0]  (!%p2065_p9), %s2061_s16, 1024, %s2069_s27, %s2071_s25, %s1931_s14, %s1931_s14, %s1932_s13  }
  0x29   : > { %p1435_p11 = scmp.ge.s32.totalorder %s1928_s22, 1  ;;  %p352_p13 = scmp.lt.s32.totalorder %s1928_s22, 3 }
  0x2b   : > { %p353_p3 = pnand %p1435_p11, %p352_p13 }
  0x2c   : > { %s358_s17 = sand.u32 (!%p353_p3), 1, %s1912_s18  }
  0x2d   : > { %356 = sbr.rel (%p353_p3) target bundleno = 2005 (0x7d5), region = 44  ;;  %s1436_s30 = sshll.u32 (!%p353_p3), %s358_s17, 6 }
  0x2e   : > { %s359_s12 = scalar_lea.sflag (!%p353_p3), [#allocation6], %s358_s17  ;;  %s362_s26 = scalar_lea.vmem (!%p353_p3), [#allocation5], %s1436_s30 }
  0x34   : > { %1895 = dma.done.wait (%p2048_p7), %s359_s12, 1024  }
  0x35   : > { %1897 = vsyncadd (%p2048_p7), %s359_s12, 4294966272  ;;  %p397_p4 = scmp.eq.s32.totalorder %s1920_s20, 0 }
  0x36   : > { %vm403_vm0 = vcmask (%p397_p4), 7168   ;;  %vm408_vm1 = vcmask (%p397_p4), 261120   ;;  %v1933_v0 = vmov (%p397_p4), -inf   ;;  %v1934_v1 = vmov (%p397_p4), 0.0  }
  0x37   : > { %402 = sbr.rel (!%p397_p4) target bundleno = 62 (0x3e), region = 52  ;;  %404 = vst.msk [vmem:[#allocation2] sm:$0xff] (%p397_p4), %vm403_vm0, %v1933_v0  ;;  %405 = vst.msk [vmem:[#allocation2 + $0x8] sm:$0xff] (%p397_p4), %vm403_vm0, %v1933_v0 }
  0x38   : > { %406 = vst.msk [vmem:[#allocation3] sm:$0xff] (%p397_p4), %vm403_vm0, %v1934_v1  ;;  %407 = vst.msk [vmem:[#allocation3 + $0x8] sm:$0xff] (%p397_p4), %vm403_vm0, %v1934_v1 }
  0x39   : > { %409 = vst.msk [vmem:[#allocation4] sm:$0xff] (%p397_p4), %vm408_vm1, %v1934_v1  ;;  %410 = vst.msk [vmem:[#allocation4 + $0x8] sm:$0xff] (%p397_p4), %vm408_vm1, %v1934_v1 }
  0x3e PF: > { %v412_v2 = vld [vmem:[%s362_s26 + $0x8] sm:$0xff]  ;;  %v414_v3 = vld [vmem:[%s362_s26 + $0x18] sm:$0xff]  ;;  %v411_v4 = vld [vmem:[%s362_s26] sm:$0xff]  ;;  %v1935_v9 = vmov 0.0   ;;  %vm421_vm2 = vcmask 261120   ;;  %v1936_v23 = vmov 0  }
  0x3f   : > { %v1585_v5 = vpack.c.bf16 %v414_v3, %v412_v2  ;;  %v413_v6 = vld [vmem:[%s362_s26 + $0x10] sm:$0xff]  ;;  %v416_v7 = vld [vmem:[%s362_s26 + $0x28] sm:$0xff]  ;;  %v418_v8 = vld [vmem:[%s362_s26 + $0x38] sm:$0xff]  ;;  %492 = vmatprep.mubr.f32.mxu0 %v1935_v9  ;;  %1735 = vset.pattern.permute.xlu1 %v1936_v23  ;;  %vm555_vm3 = vcmask 7168   ;;  %p653_p7 = scmp.eq.s32.totalorder %s1920_s20, 1 }
  0x40   : > { %v1587_v10 = vpack.c.bf16 %v413_v6, %v411_v4  ;;  %v1589_v11 = vpack.c.bf16 %v418_v8, %v416_v7  ;;  %v415_v12 = vld [vmem:[%s362_s26 + $0x20] sm:$0xff]  ;;  %v417_v13 = vld [vmem:[%s362_s26 + $0x30] sm:$0xff]  ;;  %v420_v16 = vld [vmem:[%s2458_s2 + $0x8] sm:$0xff]  ;;  %1736 = vset.pattern.permute.xlu0 %v1936_v23  ;;  %vm964_vm9 = vcmask (%p653_p7), 523264   ;;  %vm846_vm10 = vcmask (%p653_p7), 130048  }
  0x41   : > { %1586 = vmatprep.subr.bf16.mxu0 %v1585_v5  ;;  %1594 = vmatprep.subr.bf16.mxu1 %v1585_v5  ;;  %v1591_v14 = vpack.c.bf16 %v417_v13, %v415_v12  ;;  %v419_v15 = vld [vmem:[%s2458_s2] sm:$0xff]  ;;  %v506_v27 = vld [vmem:[#allocation2 + $0x8] sm:$0xff]  ;;  %v543_v52 = vld [vmem:[#allocation3] sm:$0xff] }
  0x42   : > { %1588 = vmatpush1.bf16.msra.mxu0 %v1587_v10  ;;  %1596 = vmatpush1.bf16.xpose.msra.mxu1 %v1587_v10  ;;  %v505_v24 = vld [vmem:[#allocation2] sm:$0xff]  ;;  %v544_v55 = vld [vmem:[#allocation3 + $0x8] sm:$0xff]  ;;  %v559_v63 = vld [vmem:[#allocation4 + $0x8] sm:$0xff]  ;;  %v1937_v10 = vmov (%p653_p7), 0  }
  0x43   : > { %1590 = vmatprep.subr.bf16.mxu0 %v1589_v11  ;;  %1598 = vmatprep.subr.bf16.mxu1 %v1589_v11  ;;  %v558_v60 = vld [vmem:[#allocation4] sm:$0xff]  ;;  %v677_v11 = vld [vmem:[%s2459_s3 + $0x8] sm:$0xff] (%p653_p7)  ;;  %vm2132_vm4 = vmpackc.low (%p653_p7), %vm421_vm2, %vm421_vm2 }
  0x46   : > { %1592 = vmatpush1.bf16.msra.mxu0 %v1591_v14 }
  0x49   : > { %1438 = vmatmul.mubr.msk.f32.vlgmr.msra.gmra.mrb[0].mxu0 %vm421_vm2, %v419_v15  ;;  %v678_v15 = vld [vmem:[%s2459_s3 + $0x10] sm:$0xff] (%p653_p7) }
  0x4a   : > { %498 = vmatprep.mubr.f32.mxu0 %v1935_v9  ;;  %1600 = vmatpush1.bf16.xpose.msra.mxu1 %v1591_v14  ;;  %v676_v9 = vld [vmem:[%s2459_s3] sm:$0xff] (%p653_p7) }
  0x4b   : > { %v1601_v12 = vpack.c.bf16 (%p653_p7), %v677_v11, %v676_v9 }
  0x4d   : > { %1439 = vmatmul.mubr.msk.f32.gmra.mrb[2].mxu0 %vm421_vm2, %v420_v16  ;;  %1603 = vmatprep.subr.msk.bf16.mxu0 (%p653_p7), %vm2132_vm4, %v1601_v12  ;;  %v679_v16 = vld [vmem:[%s2459_s3 + $0x18] sm:$0xff] (%p653_p7) }
  0x4f   : > { %1606 = vmatpush3.bf16.xpose.msk.msra.mxu0 (%p653_p7), %vm2132_vm4, %v1601_v12 }
 0x11c   : > { %v494_v17 = vpop.f32.mrb[0].mxu0 }
 0x11d   : > { %v496_v18 = vpop.f32.mrb[1].mxu0 }
 0x11e   : > { %v507_v19 = vmax.f32 %v494_v17, %v496_v18 }
 0x120   : > { %508 = vmax.xlane.f32.xlu0 %v507_v19  ;;  %v500_v20 = vpop.f32.mrb[2].mxu0 }
 0x121   : > { %v502_v21 = vpop.f32.mrb[3].mxu0 }
 0x122   : > { %v510_v22 = vmax.f32 %v500_v20, %v502_v21 }
 0x124   : > { %511 = vmax.xlane.f32.xlu0 %v510_v22 }
 0x1ad   : > { %v509_v25 = vpop.xlane.xlu0 %508 }
 0x1ae   : > { %v513_v26 = vmax.f32 %v505_v24, %v509_v25 }
 0x1b0   : > { %v515_v28 = vsub.f32 %v505_v24, %v513_v26  ;;  %651 = vst.msk [vmem:[#allocation2] sm:$0xff] %vm555_vm3, %v513_v26  ;;  %523 = vperm.xlu1 %1735, %v513_v26   ;;  %v1441_v26 = vld [vmem:[%s2460_s4] ss:$0 sm:$0xff] (%p653_p7) }
 0x1b1   : > { %v512_v29 = vpop.xlane.xlu0 %511 }
 0x1b2   : > { %v514_v30 = vmax.f32 %v506_v27, %v512_v29  ;;  %v517_v49 = vmul.f32 1.442695, %v515_v28  ;;  %v781_v29 = vld [vmem:[%s2457_s1 + $0x8] sm:$0xff] (%p653_p7) }
 0x1b4   : > { %v516_v31 = vsub.f32 %v506_v27, %v514_v30  ;;  %652 = vst.msk [vmem:[#allocation2 + $0x8] sm:$0xff] %vm555_vm3, %v514_v30  ;;  %528 = vperm.xlu1 %1735, %v514_v30  }
 0x1b6   : > { %v519_v48 = vmul.f32 1.442695, %v516_v31  ;;  %v780_v31 = vld [vmem:[%s2457_s1] sm:$0xff] (%p653_p7) }
 0x22f   : > { %v524_v32 = vpop.permute.xlu1 %523 }
 0x230   : > { %v531_v33 = vsub.f32 %v494_v17, %v524_v32  ;;  %v532_v34 = vsub.f32 %v496_v18, %v524_v32  ;;  %v1607_v17 = vpack.c.bf16 (%p653_p7), %v679_v16, %v678_v15 }
 0x232   : > { %v535_v35 = vmul.f32 1.442695, %v531_v33  ;;  %v537_v36 = vmul.f32 1.442695, %v532_v34  ;;  %1609 = vmatprep.subr.msk.bf16.mxu0 (%p653_p7), %vm2132_vm4, %v1607_v17 }
 0x233   : > { %v529_v37 = vpop.permute.xlu1 %528  ;;  %1612 = vmatpush3.bf16.xpose.msk.msra.mxu0 (%p653_p7), %vm2132_vm4, %v1607_v17 }
 0x234   : > { %1737 = vpow2.f32 %v535_v35  ;;  %v533_v38 = vsub.f32 %v500_v20, %v529_v37  ;;  %v534_v39 = vsub.f32 %v502_v21, %v529_v37 }
 0x235   : > { %1739 = vpow2.f32 %v537_v36 }
 0x236   : > { %v539_v40 = vmul.f32 1.442695, %v533_v38  ;;  %v541_v41 = vmul.f32 1.442695, %v534_v39  ;;  %v2166_v39 = vld [vmem:[%s2461_s5] sm:$0xff] (%p653_p7) }
 0x238   : > { %1741 = vpow2.f32 %v539_v40  ;;  %v2171_v40 = vld [vmem:[%s2461_s5 + $0x8] sm:$0xff] (%p653_p7) }
 0x239   : > { %1743 = vpow2.f32 %v541_v41  ;;  %v1613_v41 = vpack.c.bf16 (%p653_p7), %v2171_v40, %v2166_v39 }
 0x23a   : > { %1745 = vpow2.f32 %v519_v48  ;;  %v2216_v48 = vld [vmem:[%s2461_s5 + $0x30] sm:$0xff] (%p653_p7) }
 0x23b   : > { %1747 = vpow2.f32 %v517_v49  ;;  %1615 = vmatprep.subr.msk.bf16.mxu1 (%p653_p7), %vm2132_vm4, %v1613_v41  ;;  %v2221_v49 = vld [vmem:[%s2461_s5 + $0x38] sm:$0xff] (%p653_p7) }
 0x23e   : > { %v1738_v42 = vpop.eup %1737 }
 0x23f   : > { %v1740_v43 = vpop.eup %1739 }
 0x240   : > { %636 = vmatprep.mubr.f32.mxu1 %v1740_v43  ;;  %v547_v44 = vadd.f32 %v1740_v43, %v1738_v42  ;;  %v2189_v43 = vld [vmem:[%s2461_s5 + $0x18] sm:$0xff] (%p653_p7) }
 0x241   : > { %637 = vmatmul.mubr.f32.vlgmr.msra.gmra.mrb[0].mxu1 %v1738_v42  ;;  %v2184_v42 = vld [vmem:[%s2461_s5 + $0x10] sm:$0xff] (%p653_p7) }
 0x242   : > { %v1742_v45 = vpop.eup %1741  ;;  %548 = vadd.xlane.f32.xlu0 %v547_v44  ;;  %1618 = vmatpush3.bf16.xpose.msk.msra.mxu1 (%p653_p7), %vm2132_vm4, %v1613_v41  ;;  %v1619_v44 = vpack.c.bf16 (%p653_p7), %v2189_v43, %v2184_v42 }
 0x243   : > { %v1744_v46 = vpop.eup %1743 }
 0x244   : > { %641 = vmatprep.mubr.f32.mxu1 %v1744_v46  ;;  %v550_v47 = vadd.f32 %v1744_v46, %v1742_v45  ;;  %v1746_v50 = vpop.eup %1745  ;;  %1621 = vmatprep.subr.msk.bf16.mxu1 (%p653_p7), %vm2132_vm4, %v1619_v44  ;;  %v2205_v46 = vld [vmem:[%s2461_s5 + $0x28] sm:$0xff] (%p653_p7) }
 0x245   : > { %642 = vmatmul.mubr.f32.gmra.mrb[2].mxu1 %v1742_v45  ;;  %v1748_v51 = vpop.eup %1747  ;;  %v546_v57 = vmul.f32 %v1746_v50, %v544_v55  ;;  %v2200_v45 = vld [vmem:[%s2461_s5 + $0x20] sm:$0xff] (%p653_p7) }
 0x246   : > { %551 = vadd.xlane.f32.xlu1 %v550_v47  ;;  %v545_v53 = vmul.f32 %v1748_v51, %v543_v52  ;;  %v1625_v47 = vpack.c.bf16 (%p653_p7), %v2205_v46, %v2200_v45 }
 0x24a   : > { %1624 = vmatpush3.bf16.xpose.msk.msra.mxu1 (%p653_p7), %vm2132_vm4, %v1619_v44 }
 0x24b   : > { %1627 = vmatprep.subr.msk.bf16.mxu1 (%p653_p7), %vm2132_vm4, %v1625_v47 }
 0x252   : > { %1630 = vmatpush3.bf16.xpose.msk.msra.mxu1 (%p653_p7), %vm2132_vm4, %v1625_v47 }
 0x257   : > { %567 = vperm.xlu1 %1735, %v1746_v50   ;;  %v1631_v50 = vpack.c.bf16 (%p653_p7), %v2221_v49, %v2216_v48 }
 0x258   : > { %562 = vperm.xlu0 %1736, %v1748_v51  }
 0x259   : > { %1633 = vmatprep.subr.msk.bf16.mxu1 (%p653_p7), %vm2132_vm4, %v1631_v50 }
 0x25a   : > { %1636 = vmatpush3.bf16.xpose.msk.msra.mxu1 (%p653_p7), %vm2132_vm4, %v1631_v50 }
 0x25c   : > { %1749 = vset.pattern.permute.xlu0 (%p653_p7), %v1937_v10 }
 0x2cf   : > { %v549_v54 = vpop.xlane.xlu0 %548 }
 0x2d0   : > { %v553_v56 = vadd.f32 %v549_v54, %v545_v53 }
 0x2d2   : > { %556 = vst.msk [vmem:[#allocation3] sm:$0xff] %vm555_vm3, %v553_v56 }
 0x2d3   : > { %v552_v58 = vpop.xlane.xlu1 %551 }
 0x2d4   : > { %v554_v59 = vadd.f32 %v552_v58, %v546_v57 }
 0x2d6   : > { %557 = vst.msk [vmem:[#allocation3 + $0x8] sm:$0xff] %vm555_vm3, %v554_v59 }
 0x2d7   : > { %v563_v61 = vpop.permute.xlu0 %562  ;;  %v568_v0 = vpop.permute.xlu1 %567 }
 0x2d8   : > { %v570_v62 = vmul.f32 %v563_v61, %v558_v60  ;;  %v571_v4 = vmul.f32 %v568_v0, %v559_v63 }
 0x2d9   : > { %v660_v8 = vld [vmem:[#allocation3] sm:$0xff] (%p653_p7) }
 0x2da   : > { %664 = vperm.xlu0 (%p653_p7), %1749, %v660_v8  }
 0x2dd   : > { %v661_v14 = vld [vmem:[#allocation3 + $0x8] sm:$0xff] (%p653_p7) }
 0x2de   : > { %669 = vperm.xlu0 (%p653_p7), %1749, %v661_v14  }
 0x314   : > { %v638_v1 = vpop.f32.mrb[0].mxu1 }
 0x315   : > { %v647_v2 = vadd.f32 %v638_v1, %v570_v62  ;;  %v640_v3 = vpop.f32.mrb[1].mxu1  ;;  %657 = sbr.rel (!%p653_p7) target bundleno = 1933 (0x78d), region = 56 }
 0x317   : > { %649 = vst.msk [vmem:[#allocation4] sm:$0xff] %vm421_vm2, %v647_v2 }
 0x318   : > { %v643_v5 = vpop.f32.mrb[2].mxu1 }
 0x319   : > { %v648_v6 = vadd.f32 %v643_v5, %v571_v4  ;;  %v645_v7 = vpop.f32.mrb[3].mxu1 }
 0x31b   : > { %650 = vst.msk [vmem:[#allocation4 + $0x8] sm:$0xff] %vm421_vm2, %v648_v6 }
 0x31e   : > { %v658_v20 = vld [vmem:[#allocation4] sm:$0xff] }
 0x322   : > { %v659_v23 = vld [vmem:[#allocation4 + $0x8] sm:$0xff] }
 0x359   : > { %v665_v18 = vpop.permute.xlu0 %664 }
 0x35a   : > { %1750 = vrcp.f32 %v665_v18 }
 0x35d   : > { %v670_v19 = vpop.permute.xlu0 %669 }
 0x35e   : > { %1752 = vrcp.f32 %v670_v19 }
 0x364   : > { %v1751_v21 = vpop.eup %1750 }
 0x365   : > { %v673_v22 = vmul.f32 %v1751_v21, %v658_v20 }
 0x367   : > { %1531 = vmatprep.mubr.msk.f32.mxu0 %vm421_vm2, %v673_v22 }
 0x368   : > { %v1753_v24 = vpop.eup %1752 }
 0x369   : > { %v675_v25 = vmul.f32 %v1753_v24, %v659_v23 }
 0x36b   : > { %1532 = vmatmul.mubr.msk.f32.vlgmr.msra.gmra.mrb[0].mxu0 %vm421_vm2, %v675_v25 }
 0x36c   : > { %1557 = vmatprep.mubr.msk.f32.mxu0 %vm421_vm2, %v2166_v39 }
 0x43e   : > { %v1533_v27 = vpop.f32.mrb[0].mxu0 }
 0x43f   : > { %v777_v28 = vadd.f32 %v1533_v27, %v1441_v26  ;;  %v771_v30 = vpop.f32.mrb[1].mxu0 }
 0x440   : > { %v772_v32 = vadd.f32 %v1441_v26, %v771_v30 }
 0x441   : > { %v783_v33 = vadd.f32 %v781_v29, %v777_v28 }
 0x442   : > { %v782_v34 = vadd.f32 %v780_v31, %v772_v32 }
 0x443   : > { %v785_v37 = vmul.f32 %v783_v33, %v783_v33 }
 0x444   : > { %v784_v35 = vmul.f32 %v782_v34, %v782_v34 }
 0x445   : > { %v789_v38 = vsel %vm421_vm2, %v785_v37, 0.0 }
 0x446   : > { %v786_v36 = vsel %vm421_vm2, %v784_v35, 0.0 }
 0x447   : > { %787 = vadd.xlane.f32.xlu1 %v786_v36 }
 0x44b   : > { %790 = vadd.xlane.f32.xlu1 %v789_v38 }
 0x4d4   : > { %v788_v51 = vpop.xlane.xlu1 %787 }
 0x4d5   : > { %1754 = vrsqrt.f32 %v788_v51  ;;  %vm794_vm5 = vcmp.eq.f32.partialorder %v788_v51, inf  ;;  %v797_v55 = vand.u32 2147483648, %v788_v51  ;;  %vm796_vm6 = vcmp.eq.f32.partialorder %v788_v51, 0.0 }
 0x4d8   : > { %v791_v52 = vpop.xlane.xlu1 %790 }
 0x4d9   : > { %1756 = vrsqrt.f32 %v791_v52  ;;  %vm801_vm7 = vcmp.eq.f32.partialorder %v791_v52, inf  ;;  %v804_v61 = vand.u32 2147483648, %v791_v52  ;;  %vm803_vm8 = vcmp.eq.f32.partialorder %v791_v52, 0.0 }
 0x4df   : > { %v1755_v53 = vpop.eup %1754 }
 0x4e0   : > { %v793_v54 = vmul.f32 %v1755_v53, %v788_v51 }
 0x4e2   : > { %v795_v56 = vsel %vm794_vm5, %v788_v51, %v793_v54 }
 0x4e3   : > { %v1757_v57 = vpop.eup %1756  ;;  %v798_v58 = vsel %vm796_vm6, %v797_v55, %v795_v56 }
 0x4e4   : > { %v806_v59 = vmax.f32 %v798_v58, 1e-12  ;;  %v800_v60 = vmul.f32 %v1757_v57, %v791_v52 }
 0x4e6   : > { %1758 = vrcp.f32 %v806_v59  ;;  %v802_v62 = vsel %vm801_vm7, %v791_v52, %v800_v60 }
 0x4e7   : > { %v805_v63 = vsel %vm803_vm8, %v804_v61, %v802_v62 }
 0x4e8   : > { %v807_v0 = vmax.f32 %v805_v63, 1e-12 }
 0x4ea   : > { %1760 = vrcp.f32 %v807_v0 }
 0x4f0   : > { %v1759_v1 = vpop.eup %1758 }
 0x4f1   : > { %v809_v2 = vmul.f32 %v1759_v1, %v782_v34 }
 0x4f3   : > { %814 = vxpose.xlu0.b32.start [1/2] (short) (narrow) %v809_v2, 32  ;;  %812 = vst.msk [vmem:[#allocation8] sm:$0xff] %vm421_vm2, %v809_v2  ;;  %1550 = vmatprep.mubr.msk.f32.mxu1 %vm421_vm2, %v809_v2 }
 0x4f4   : > { %v1761_v3 = vpop.eup %1760 }
 0x4f5   : > { %v811_v4 = vmul.f32 %v1761_v3, %v783_v33 }
 0x4f7   : > { %815 = vxpose.xlu0.b32.end [2/2] (short) (narrow) %v811_v4, 32  ;;  %813 = vst.msk [vmem:[#allocation8 + $0x8] sm:$0xff] %vm421_vm2, %v811_v4  ;;  %v1637_v5 = vpack.c.bf16 %v811_v4, %v809_v2  ;;  %1551 = vmatmul.mubr.msk.f32.vlgmr.msra.gmra.mrb[0].mxu1 %vm421_vm2, %v811_v4 }
 0x4f9   : > { %1639 = vmatprep.subr.msk.bf16.mxu0 %vm2132_vm4, %v1637_v5  ;;  %1647 = vmatprep.subr.bf16.mxu1 %v1637_v5 }
 0x4fa   : > { %1642 = vmatpush3.bf16.xpose.msk.msra.mxu0 %vm2132_vm4, %v1637_v5  ;;  %1648 = vmatpush3.bf16.msra.mxu1 %v1637_v5 }
 0x4fb   : > { %1644 = vmatprep.subr.bf16.mxu0 %v1637_v5 }
 0x501   : > { %1558 = vmatmul.mubr.msk.f32.vlgmr.msra.gmra.mrb[2].mxu0 %vm421_vm2, %v2171_v40 }
 0x502   : > { %1646 = vmatpush3.bf16.msra.mxu0 %v1637_v5  ;;  %1560 = vmatprep.mubr.msk.f32.mxu0 %vm421_vm2, %v2184_v42 }
 0x505   : > { %1561 = vmatmul.mubr.msk.f32.gmra.mrb[4].mxu0 %vm421_vm2, %v2189_v43 }
 0x506   : > { %1563 = vmatprep.mubr.msk.f32.mxu0 %vm421_vm2, %v2200_v45 }
 0x509   : > { %1564 = vmatmul.mubr.msk.f32.gmra.mrb[6].mxu0 %vm421_vm2, %v2205_v46 }
 0x50a   : > { %1566 = vmatprep.mubr.msk.f32.mxu0 %vm421_vm2, %v2216_v48 }
 0x50d   : > { %1567 = vmatmul.mubr.msk.f32.gmra.mrb[8].mxu0 %vm421_vm2, %v2221_v49 }
 0x5ca   : > { %v1552_v6 = vpop.f32.mrb[0].mxu1 }
 0x5cb   : > { %966 = vst.msk [vmem:[#allocation9 + $0x8] sm:$0xff] %vm964_vm9, %v1552_v6  ;;  %v955_v7 = vpop.f32.mrb[1].mxu1 }
 0x5cc   : > { %965 = vst.msk [vmem:[#allocation9] sm:$0xff] %vm964_vm9, %v955_v7 }
 0x5d4   : > { %v1559_v8 = vpop.f32.mrb[2].mxu0 }
 0x5d5   : > { %v1033_v9 = vpop.f32.mrb[3].mxu0 }
 0x5d6   : > { %1573 = vmatprep.mubr.msk.f32.mxu0 %vm846_vm10, %v1033_v9 }
 0x5d7   : > { %1574 = vmatmul.mubr.msk.f32.vlgmr.msra.gmra.mrb[10].mxu0 %vm846_vm10, %v1559_v8 }
 0x5d8   : > { %v1562_v10 = vpop.f32.mrb[4].mxu0 }
 0x5d9   : > { %v1043_v11 = vpop.f32.mrb[5].mxu0 }
 0x5da   : > { %1576 = vmatprep.mubr.msk.f32.mxu1 %vm846_vm10, %v1043_v11 }
 0x5db   : > { %1577 = vmatmul.mubr.msk.f32.vlgmr.msra.gmra.mrb[2].mxu1 %vm846_vm10, %v1562_v10 }
 0x5dc   : > { %v1565_v12 = vpop.f32.mrb[6].mxu0 }
 0x5dd   : > { %v1053_v13 = vpop.f32.mrb[7].mxu0 }
 0x5de   : > { %1579 = vmatprep.mubr.msk.f32.mxu1 %vm846_vm10, %v1053_v13 }
 0x5df   : > { %1580 = vmatmul.mubr.msk.f32.gmra.mrb[4].mxu1 %vm846_vm10, %v1565_v12 }
 0x5e0   : > { %v1568_v14 = vpop.f32.mrb[8].mxu0 }
 0x5e1   : > { %v1063_v15 = vpop.f32.mrb[9].mxu0 }
 0x5e2   : > { %1582 = vmatprep.mubr.msk.f32.mxu1 %vm846_vm10, %v1063_v15 }
 0x5e3   : > { %1583 = vmatmul.mubr.msk.f32.gmra.mrb[6].mxu1 %vm846_vm10, %v1568_v14 }
 0x6aa   : > { %v1575_v16 = vpop.f32.mrb[10].mxu0 }
 0x6ab   : > { %v1202_v17 = vsub.f32 %v2171_v40, %v1575_v16  ;;  %v1162_v18 = vpop.f32.mrb[11].mxu0 }
 0x6ac   : > { %v1201_v19 = vsub.f32 %v2166_v39, %v1162_v18 }
 0x6ad   : > { %1210 = vst.msk [vmem:[%s2465_s9 + $0x8] sm:$0xff] %vm421_vm2, %v1202_v17  ;;  %v1254_v20 = vmul.f32 %v1202_v17, %v1202_v17 }
 0x6ae   : > { %1209 = vst.msk [vmem:[%s2465_s9] sm:$0xff] %vm421_vm2, %v1201_v19  ;;  %v1578_v21 = vpop.f32.mrb[2].mxu1  ;;  %v1253_v25 = vmul.f32 %v1201_v19, %v1201_v19 }
 0x6af   : > { %v1204_v22 = vsub.f32 %v2189_v43, %v1578_v21  ;;  %v1264_v23 = vsel %vm421_vm2, %v1254_v20, 0.0  ;;  %v1172_v24 = vpop.f32.mrb[3].mxu1 }
 0x6b0   : > { %1265 = vadd.xlane.f32.xlu1 %v1264_v23  ;;  %v1203_v26 = vsub.f32 %v2184_v42, %v1172_v24  ;;  %v1261_v28 = vsel %vm421_vm2, %v1253_v25, 0.0 }
 0x6b1   : > { %1212 = vst.msk [vmem:[%s2465_s9 + $0x18] sm:$0xff] %vm421_vm2, %v1204_v22  ;;  %v1256_v30 = vmul.f32 %v1204_v22, %v1204_v22 }
 0x6b2   : > { %1211 = vst.msk [vmem:[%s2465_s9 + $0x10] sm:$0xff] %vm421_vm2, %v1203_v26  ;;  %v1581_v27 = vpop.f32.mrb[4].mxu1  ;;  %v1255_v35 = vmul.f32 %v1203_v26, %v1203_v26 }
 0x6b3   : > { %v1206_v29 = vsub.f32 %v2205_v46, %v1581_v27  ;;  %v1182_v31 = vpop.f32.mrb[5].mxu1  ;;  %v1270_v34 = vsel %vm421_vm2, %v1256_v30, 0.0 }
 0x6b4   : > { %1262 = vadd.xlane.f32.xlu1 %v1261_v28  ;;  %v1205_v32 = vsub.f32 %v2200_v45, %v1182_v31  ;;  %v1267_v39 = vsel %vm421_vm2, %v1255_v35, 0.0 }
 0x6b5   : > { %1214 = vst.msk [vmem:[%s2465_s9 + $0x28] sm:$0xff] %vm421_vm2, %v1206_v29  ;;  %v1258_v40 = vmul.f32 %v1206_v29, %v1206_v29 }
 0x6b6   : > { %1213 = vst.msk [vmem:[%s2465_s9 + $0x20] sm:$0xff] %vm421_vm2, %v1205_v32  ;;  %v1584_v33 = vpop.f32.mrb[6].mxu1  ;;  %v1257_v42 = vmul.f32 %v1205_v32, %v1205_v32 }
 0x6b7   : > { %v1208_v36 = vsub.f32 %v2221_v49, %v1584_v33  ;;  %v1192_v37 = vpop.f32.mrb[7].mxu1  ;;  %v1276_v41 = vsel %vm421_vm2, %v1258_v40, 0.0 }
 0x6b8   : > { %1271 = vadd.xlane.f32.xlu1 %v1270_v34  ;;  %v1207_v38 = vsub.f32 %v2216_v48, %v1192_v37  ;;  %v1273_v43 = vsel %vm421_vm2, %v1257_v42, 0.0  ;;  %v830_v48 = vpop.trf.xlu0 }
 0x6b9   : > { %1216 = vst.msk [vmem:[%s2465_s9 + $0x38] sm:$0xff] %vm421_vm2, %v1208_v36  ;;  %v1260_v44 = vmul.f32 %v1208_v36, %v1208_v36 }
 0x6ba   : > { %1215 = vst.msk [vmem:[%s2465_s9 + $0x30] sm:$0xff] %vm421_vm2, %v1207_v38  ;;  %v1259_v46 = vmul.f32 %v1207_v38, %v1207_v38 }
 0x6bb   : > { %v1282_v45 = vsel %vm421_vm2, %v1260_v44, 0.0  ;;  %847 = vst.msk [vmem:[%s2463_s7] sm:$0xff] %vm846_vm10, %v830_v48 }
 0x6bc   : > { %1268 = vadd.xlane.f32.xlu1 %v1267_v39  ;;  %v1279_v47 = vsel %vm421_vm2, %v1259_v46, 0.0  ;;  %v831_v49 = vpop.trf.xlu0 }
 0x6bd   : > { %848 = vst.msk [vmem:[%s2463_s7 + $0x8] sm:$0xff] %vm846_vm10, %v831_v49 }
 0x6c0   : > { %1277 = vadd.xlane.f32.xlu1 %v1276_v41  ;;  %v832_v50 = vpop.trf.xlu0 }
 0x6c1   : > { %849 = vst.msk [vmem:[%s2463_s7 + $0x10] sm:$0xff] %vm846_vm10, %v832_v50 }
 0x6c4   : > { %1274 = vadd.xlane.f32.xlu1 %v1273_v43  ;;  %v833_v51 = vpop.trf.xlu0 }
 0x6c5   : > { %850 = vst.msk [vmem:[%s2463_s7 + $0x18] sm:$0xff] %vm846_vm10, %v833_v51 }
 0x6c8   : > { %1283 = vadd.xlane.f32.xlu1 %v1282_v45 }
 0x6cc   : > { %1280 = vadd.xlane.f32.xlu1 %v1279_v47 }
 0x6ff   : > { %1217 = vxpose.xlu1.b32.start [1/8] (short) (narrow) %v1201_v19, 32 }
 0x703   : > { %1218 = vxpose.xlu1.b32.cont [2/8] (short) (narrow) %v1202_v17, 32 }
 0x707   : > { %1219 = vxpose.xlu1.b32.cont [3/8] (short) (narrow) %v1203_v26, 32 }
 0x70b   : > { %1220 = vxpose.xlu1.b32.cont [4/8] (short) (narrow) %v1204_v22, 32 }
 0x70f   : > { %1221 = vxpose.xlu1.b32.cont [5/8] (short) (narrow) %v1205_v32, 32 }
 0x713   : > { %1222 = vxpose.xlu1.b32.cont [6/8] (short) (narrow) %v1206_v29, 32 }
 0x717   : > { %1223 = vxpose.xlu1.b32.cont [7/8] (short) (narrow) %v1207_v38, 32 }
 0x71b   : > { %1224 = vxpose.xlu1.b32.end [8/8] (short) (narrow) %v1208_v36, 32 }
 0x73d   : > { %v1266_v52 = vpop.xlane.xlu1 %1265 }
 0x73e   : > { %1286 = vst.msk [vmem:[%s2467_s11 + $0x8] sm:$0xff] %vm555_vm3, %v1266_v52 }
 0x741   : > { %v1263_v53 = vpop.xlane.xlu1 %1262 }
 0x742   : > { %1285 = vst.msk [vmem:[%s2467_s11] sm:$0xff] %vm555_vm3, %v1263_v53 }
 0x745   : > { %v1272_v54 = vpop.xlane.xlu1 %1271 }
 0x746   : > { %1288 = vst.msk [vmem:[%s2467_s11 + $0x18] sm:$0xff] %vm555_vm3, %v1272_v54 }
 0x749   : > { %v1269_v55 = vpop.xlane.xlu1 %1268 }
 0x74a   : > { %1287 = vst.msk [vmem:[%s2467_s11 + $0x10] sm:$0xff] %vm555_vm3, %v1269_v55 }
 0x74d   : > { %v1278_v56 = vpop.xlane.xlu1 %1277 }
 0x74e   : > { %1290 = vst.msk [vmem:[%s2467_s11 + $0x28] sm:$0xff] %vm555_vm3, %v1278_v56 }
 0x751   : > { %v1275_v57 = vpop.xlane.xlu1 %1274 }
 0x752   : > { %1289 = vst.msk [vmem:[%s2467_s11 + $0x20] sm:$0xff] %vm555_vm3, %v1275_v57 }
 0x755   : > { %v1284_v58 = vpop.xlane.xlu1 %1283 }
 0x756   : > { %1292 = vst.msk [vmem:[%s2467_s11 + $0x38] sm:$0xff] %vm555_vm3, %v1284_v58 }
 0x759   : > { %v1281_v59 = vpop.xlane.xlu1 %1280 }
 0x75a   : > { %1291 = vst.msk [vmem:[%s2467_s11 + $0x30] sm:$0xff] %vm555_vm3, %v1281_v59 }
 0x77f   : > { %v1233_v60 = vpop.trf.xlu1 }
 0x780   : > { %1249 = vst.msk [vmem:[#allocation11] sm:$0xff] %vm964_vm9, %v1233_v60 }
 0x783   : > { %v1234_v61 = vpop.trf.xlu1 }
 0x784   : > { %1250 = vst.msk [vmem:[#allocation11 + $0x8] sm:$0xff] %vm964_vm9, %v1234_v61 }
 0x787   : > { %v1235_v62 = vpop.trf.xlu1 }
 0x788   : > { %1251 = vst.msk [vmem:[#allocation11 + $0x10] sm:$0xff] %vm964_vm9, %v1235_v62 }
 0x78b   : > { %v1236_v63 = vpop.trf.xlu1 }
 0x78c   : > { %1252 = vst.msk [vmem:[#allocation11 + $0x18] sm:$0xff] %vm964_vm9, %v1236_v63 }
 0x78d PF: > { %s2474_s17 = sadd.s32 4294967295, %s1928_s22   ;;  %s1938_s12 = smov [#allocation9]  }
 0x78e   : > { %p2363_p9 = scmp.eq.s32.totalorder %s2474_s17, 1  ;;  %s1315_s26 = sshll.u32 %s1938_s12, 4  ;;  %s1316_s26 = int_to_ptr.vmem [resolvable:$true] %s1315_s26 }
 0x78f   : > { %s1792_s23 = scalar_lea.vmem %s1316_s26, 256  ;;  %p1799_p10 = scmp.lt.s32.totalorder %s1316_s26, %s1316_s26 }
 0x790   : > { %p1793_p5 = scmp.ne.s32.totalorder %s1316_s26, %s1792_s23  ;;  %p1800_p12 = scmp.lt.s32.totalorder %s1792_s23, %s1792_s23 }
 0x792   : > { %p1794_p6 = pnand %p1793_p5, %p2363_p9  ;;  %p1801_p0 = por %p1800_p12, %p1799_p10 }
 0x794   : > { %p1795_p8 = pneg %p1794_p6 }
 0x796   : > { %p1802_p1 = pnand %p1801_p0, %p1795_p8 }
 0x798   : > { %1805 = shalt.err (!%p1802_p1)
}
 0x799   : > { %s1806_s27 = scalar_lea.hbm %s2464_s8, 256 }
 0x79a   : > { %p1807_p2 = scmp.ne.s32.totalorder %s2464_s8, %s1806_s27  ;;  %p1812_p3 = scmp.lt.u32.totalorder %s1806_s27, %s2464_s8 }
 0x79c   : > { %p1808_p11 = pnand %p1807_p2, %p2363_p9 }
 0x79e   : > { %p1809_p13 = pneg %p1808_p11 }
 0x7a0   : > { %p1814_p4 = pnand %p1812_p3, %p1809_p13 }
 0x7a2   : > { %1817 = shalt.err (!%p1814_p4)
}
 0x7a3   : > { %s1939_s20 = smov 128   ;;  %s1940_s17 = smov 8  }
 0x7a4   : > { %1654 = dma.vmem_to_hbm [thread:$0]  (%p2363_p9), %s1316_s26, 256, %s2464_s8, [#allocation10], %s1939_s20, %s1939_s20, %s1940_s17  }
 0x7a5   : > { %s1941_s28 = smov [#allocation8]   ;;  %s1942_s25 = smov [#allocation11]  }
 0x7a6   : > { %s1299_s16 = sshll.u32 %s1941_s28, 4  ;;  %s1331_s15 = sshll.u32 %s1942_s25, 4  ;;  %s1300_s16 = int_to_ptr.vmem [resolvable:$true] %s1299_s16  ;;  %s1332_s15 = int_to_ptr.vmem [resolvable:$true] %s1331_s15 }
 0x7a7   : > { %s1818_s27 = scalar_lea.vmem %s1300_s16, 256  ;;  %p1825_p8 = scmp.lt.s32.totalorder %s1300_s16, %s1300_s16 }
 0x7a8   : > { %p1819_p7 = scmp.ne.s32.totalorder %s1300_s16, %s1818_s27  ;;  %p1826_p10 = scmp.lt.s32.totalorder %s1818_s27, %s1818_s27 }
 0x7aa   : > { %p1820_p5 = pnand %p1819_p7, %p2363_p9  ;;  %p1827_p12 = por %p1826_p10, %p1825_p8 }
 0x7ac   : > { %p1821_p6 = pneg %p1820_p5 }
 0x7ae   : > { %p1828_p0 = pnand %p1827_p12, %p1821_p6 }
 0x7b0   : > { %1831 = shalt.err (!%p1828_p0)
}
 0x7b1   : > { %s1832_s26 = scalar_lea.hbm %s2462_s6, 256 }
 0x7b2   : > { %p1833_p1 = scmp.ne.s32.totalorder %s2462_s6, %s1832_s26  ;;  %p1838_p13 = scmp.lt.u32.totalorder %s1832_s26, %s2462_s6 }
 0x7b4   : > { %p1834_p2 = pnand %p1833_p1, %p2363_p9 }
 0x7b6   : > { %p1835_p11 = pneg %p1834_p2 }
 0x7b8   : > { %p1840_p3 = pnand %p1838_p13, %p1835_p11 }
 0x7ba   : > { %1843 = shalt.err (!%p1840_p3)
}
 0x7bb   : > { %1652 = dma.vmem_to_hbm [thread:$0]  (%p2363_p9), %s1300_s16, 256, %s2462_s6, [#allocation7], %s1939_s20, %s1939_s20, %s1940_s17  }
 0x7bc   : > { %s1844_s13 = scalar_lea.vmem %s1332_s15, 512  ;;  %p1851_p6 = scmp.lt.s32.totalorder %s1332_s15, %s1332_s15 }
 0x7bd   : > { %p1845_p4 = scmp.ne.s32.totalorder %s1332_s15, %s1844_s13  ;;  %p1852_p8 = scmp.lt.s32.totalorder %s1844_s13, %s1844_s13 }
 0x7bf   : > { %p1846_p7 = pnand %p1845_p4, %p2363_p9  ;;  %p1853_p10 = por %p1852_p8, %p1851_p6 }
 0x7c1   : > { %p1847_p5 = pneg %p1846_p7 }
 0x7c3   : > { %p1854_p12 = pnand %p1853_p10, %p1847_p5 }
 0x7c5   : > { %1857 = shalt.err (!%p1854_p12)
}
 0x7c6   : > { %s1858_s23 = scalar_lea.hbm %s2466_s10, 512 }
 0x7c7   : > { %p1859_p0 = scmp.ne.s32.totalorder %s2466_s10, %s1858_s23  ;;  %p1864_p11 = scmp.lt.u32.totalorder %s1858_s23, %s2466_s10 }
 0x7c9   : > { %p1860_p1 = pnand %p1859_p0, %p2363_p9 }
 0x7cb   : > { %p1861_p2 = pneg %p1860_p1 }
 0x7cd   : > { %p1866_p13 = pnand %p1864_p11, %p1861_p2 }
 0x7cf   : > { %1869 = shalt.err (!%p1866_p13)
}
 0x7d0   : > { %1656 = dma.vmem_to_hbm [thread:$0]  (%p2363_p9), %s1332_s15, 512, %s2466_s10, [#allocation10], %s1939_s20, %s1939_s20, %s1940_s17  }
 0x7d1   : > { %1899 = dma.done.wait (%p2363_p9), [#allocation7], 256  }
 0x7d2   : > { %1901 = vsyncadd (%p2363_p9), [#allocation7], 4294967040 }
 0x7d3   : > { %1903 = dma.done.wait (%p2363_p9), [#allocation10], 768  }
 0x7d4   : > { %1905 = vsyncadd (%p2363_p9), [#allocation10], 4294966528 }
 0x7d5 PF: > { %s27_s22 = sadd.s32 1, %s1928_s22   ;;  %s2476_s17 = smov %s1912_s18 }
 0x7d6   : > { %p24_p3 = scmp.ge.s32.totalorder %s27_s22, 4   ;;  %s2477_s18 = smov %s1916_s19 }
 0x7d7   : > { %s2478_s19 = smov %s2054_s29  ;;  %s2479_s20 = smov %s1924_s21 }
 0x7d8   : > { %s2480_s21 = smov %s2482_s24  ;;  %26 = sbr.rel (!%p24_p3) target bundleno = 6 (0x6), region = 129 }
 0x7df   :  { %1367 = vsyncpa [#allocation6], 1 }
 0x7e0   :  { %1369 = vsyncpa [#allocation6 + $0x1], 1 }
 0x7e1   :  { %1370 = vsyncpa [#allocation7], 1 }
 0x7e2   :  { %1372 = vsyncpa [#allocation7 + $0x1], 1 }
 0x7e3   :  { %1373 = vsyncpa [#allocation10], 1 }

</bundles_post_ra>
